<compile_context>
chip_gen: v5e
topology: v5e:2x2
jax: 0.10.0
libtpu: 0.0.40
codegen_flags: <defaults>
</compile_context>

<pallas_src>
import jax
import jax.numpy as jnp
from jax import lax
from jax.experimental import pallas as pl
from jax.experimental.pallas import tpu as pltpu

NUM_LABELS = 20
M = 32
NUM_FINAL_CHANNELS = M * 5          # 160  (m * len(blocks))
LABEL_HIDDEN = 64
PRED_HIDDEN = 64
CAT_DIM = NUM_FINAL_CHANNELS + LABEL_HIDDEN   # 224


def _round_up(x, m):
    return ((x + m - 1) // m) * m


def _validator_head_kernel(feats_ref, labels_ref, w2a_ref, t_ref, b2_ref,
                           w3_ref, b3_ref, out_ref):
    tile_n = feats_ref.shape[0]

    # one-hot(labels): exactly `labels.unsqueeze(-1) == arange(20)` semantics
    # (out-of-range labels -> all-zero row, handled exactly by the T/b2_eff fold).
    lab = labels_ref[...]                                              # (tile_n, 1) i32
    iota = lax.broadcasted_iota(jnp.int32, (tile_n, NUM_LABELS), 1)    # (tile_n, 20)
    onehot = (lab == iota).astype(jnp.float32)                         # (tile_n, 20)

    # fused first pred layer:  relu(feats @ w2[:160] + onehot @ T + b2_eff)
    h = jnp.dot(feats_ref[...], w2a_ref[...],
                preferred_element_type=jnp.float32)                    # (tile_n, 64)
    h = h + jnp.dot(onehot, t_ref[...],
                    preferred_element_type=jnp.float32)
    h = jnp.maximum(h + b2_ref[...], 0.0)                              # (tile_n, 64) f32

    # final Linear(64, 1), emitted lane-dense:  (1,64) · (tile_n,64)^T -> (1, tile_n)
    out = lax.dot_general(w3_ref[...], h,
                          dimension_numbers=(((1,), (1,)), ((), ())),
                          preferred_element_type=jnp.float32)          # (1, tile_n)
    out_ref[...] = out + b3_ref[...]


def init_params(key):
    k1, k2, k3 = jax.random.split(key, 3)

    def linear(k, fan_in, fan_out):
        bound = 1.0 / jnp.sqrt(fan_in)
        kw, kb = jax.random.split(k)
        w = jax.random.uniform(kw, (fan_in, fan_out), jnp.float32, -bound, bound)
        b = jax.random.uniform(kb, (1, fan_out), jnp.float32, -bound, bound)
        return w, b

    w1, b1 = linear(k1, NUM_LABELS, LABEL_HIDDEN)
    w2, b2 = linear(k2, CAT_DIM, PRED_HIDDEN)
    w3, b3 = linear(k3, PRED_HIDDEN, 1)
    return {"w1": w1, "b1": b1, "w2": w2, "b2": b2, "w3": w3, "b3": b3}


def _fold_params(params, feats_dtype):
    """Fold label_encoder + the label half of pred[0] into a 20x64 table.

    Exact (including the out-of-range-label case, where the one-hot row is all
    zeros and the contribution reduces to relu(b1) @ w2b, folded into b2_eff).
    In production this would be precomputed once per checkpoint.
    """
    w1, b1 = params["w1"], params["b1"]              # (20, 64), (1, 64)
    w2, b2 = params["w2"], params["b2"]              # (224, 64), (1, 64)
    w3, b3 = params["w3"], params["b3"]              # (64, 1), (1, 1)

    w2a = w2[:NUM_FINAL_CHANNELS]                    # (160, 64)  feats half
    w2b = w2[NUM_FINAL_CHANNELS:]                    # (64, 64)   label half

    base = jnp.maximum(b1, 0.0)                      # relu of bias-only label path
    table = (jnp.maximum(w1 + b1, 0.0) - base) @ w2b           # (20, 64)
    b2_eff = b2 + base @ w2b                                   # (1, 64)

    return {
        "w2a": w2a.astype(feats_dtype),
        "table": table.astype(jnp.float32),
        "b2_eff": b2_eff.astype(jnp.float32),
        "w3_row": w3.reshape(1, PRED_HIDDEN).astype(jnp.float32),
        "b3": b3.reshape(1, 1).astype(jnp.float32),
    }


def validator_forward(sparse_dense_feats, labels, params, *,
                      feats_dtype=jnp.bfloat16, tile_n=1024):
    """Dense head of Validator.forward.

    sparse_dense_feats: stand-in for sparseModel((coords, colors)) after
        .view(-1, num_final_channels); shape (R, 160), float32.
    labels: (R-1,) int32 class ids in [0, 20).
    Returns: (R-1,) float32  (== pred.view(-1)).
    """
    # TODO(synk): the [1:] row drop forces an offset copy of feats in HBM; if the
    #             backbone could emit the dummy row last this copy would vanish.
    feats = sparse_dense_feats.reshape(-1, NUM_FINAL_CHANNELS)[1:]   # drop row 0
    n = feats.shape[0]
    labels2d = labels.astype(jnp.int32).reshape(n, 1)

    folded = _fold_params(params, feats_dtype)
    feats = feats.astype(feats_dtype)          # bf16 halves HBM traffic (f32 accum)

    # Row tile: multiple of 128 (lane-dense output, v5e MXU M granularity);
    # double-buffered bf16 feats tile @ 1024 rows is ~0.6 MiB -> fits every
    # generation's scoped VMEM (v7x 32 MiB) with large headroom.
    tile = _round_up(min(int(tile_n), _round_up(n, 128)), 128)
    num_tiles = pl.cdiv(n, tile)
    n_pad = num_tiles * tile
    if n_pad != n:                             # pad ragged tail; sliced off below
        feats = jnp.pad(feats, ((0, n_pad - n), (0, 0)))
        labels2d = jnp.pad(labels2d, ((0, n_pad - n), (0, 0)))

    out = pl.pallas_call(
        _validator_head_kernel,
        out_shape=jax.ShapeDtypeStruct((1, n_pad), jnp.float32),
        grid=(num_tiles,),
        in_specs=[
            pl.BlockSpec((tile, NUM_FINAL_CHANNELS), lambda i: (i, 0)),     # feats
            pl.BlockSpec((tile, 1), lambda i: (i, 0)),                      # labels
            pl.BlockSpec((NUM_FINAL_CHANNELS, PRED_HIDDEN), lambda i: (0, 0)),  # w2a
            pl.BlockSpec((NUM_LABELS, PRED_HIDDEN), lambda i: (0, 0)),      # table
            pl.BlockSpec((1, PRED_HIDDEN), lambda i: (0, 0)),               # b2_eff
            pl.BlockSpec((1, PRED_HIDDEN), lambda i: (0, 0)),               # w3 row
            pl.BlockSpec((1, 1), lambda i: (0, 0)),                         # b3
        ],
        out_specs=pl.BlockSpec((1, tile), lambda i: (0, i)),                # lane-dense
        compiler_params=pltpu.CompilerParams(
            dimension_semantics=("parallel",)),      # shards rows across v7x's 2 TCs
    )(feats, labels2d, folded["w2a"], folded["table"], folded["b2_eff"],
      folded["w3_row"], folded["b3"])

    return out.reshape(-1)[:n]


def _reference_forward(sparse_dense_feats, labels, params):
    feats = sparse_dense_feats.reshape(-1, NUM_FINAL_CHANNELS)[1:]
    onehot = (labels[:, None].astype(jnp.int32) ==
              jnp.arange(NUM_LABELS, dtype=jnp.int32)[None, :]).astype(jnp.float32)
    label_x = jnp.maximum(onehot @ params["w1"] + params["b1"], 0.0)
    x = jnp.concatenate([feats, label_x], axis=1)
    h = jnp.maximum(x @ params["w2"] + params["b2"], 0.0)
    return (h @ params["w3"] + params["b3"]).reshape(-1)


if __name__ == "__main__":
    key = jax.random.PRNGKey(0)
    k_params, k_feats, k_labels = jax.random.split(key, 3)

    params = init_params(k_params)

    # Stand-in for the scn sparse backbone output (SparseToDense, flattened):
    # 301 dense rows -> 300 after the [1:] drop, matching 300 labels.
    # tile_n=128 exercises a multi-step row grid plus ragged-tail padding.
    n_rows = 301
    sparse_dense_feats = jax.random.normal(
        k_feats, (n_rows, NUM_FINAL_CHANNELS), jnp.float32)
    labels = jax.random.randint(k_labels, (n_rows - 1,), 0, NUM_LABELS, jnp.int32)

    ref = _reference_forward(sparse_dense_feats, labels, params)

    # f32 path: bit-faithful to the torch module (tight tolerance).
    pred_f32 = validator_forward(sparse_dense_feats, labels, params,
                                 feats_dtype=jnp.float32, tile_n=128)
    pred_f32 = jax.block_until_ready(pred_f32)
    assert pred_f32.shape == (n_rows - 1,)
    assert jnp.allclose(pred_f32, ref, atol=1e-4, rtol=1e-4)

    # bf16-feats path (default): halves HBM traffic on the dominant stream,
    # f32 accumulation keeps error small.
    pred_bf16 = validator_forward(sparse_dense_feats, labels, params,
                                  feats_dtype=jnp.bfloat16, tile_n=128)
    pred_bf16 = jax.block_until_ready(pred_bf16)
    assert pred_bf16.shape == (n_rows - 1,)
    assert jnp.allclose(pred_bf16, ref, atol=3e-2, rtol=3e-2)

    print("KERNEL_OK")
</pallas_src>

<mosaic_0001>
module attributes {stable_mosaic.version = 11 : i64} {
  func.func @_validator_head_kernel(%arg0: i32, %arg1: memref<128x160xf32, #tpu.memory_space<vmem>>, %arg2: memref<128x1xi32, #tpu.memory_space<vmem>>, %arg3: memref<160x64xf32, #tpu.memory_space<vmem>>, %arg4: memref<20x64xf32, #tpu.memory_space<vmem>>, %arg5: memref<1x64xf32, #tpu.memory_space<vmem>>, %arg6: memref<1x64xf32, #tpu.memory_space<vmem>>, %arg7: memref<1x1xf32, #tpu.memory_space<vmem>>, %arg8: memref<1x128xf32, #tpu.memory_space<vmem>>) attributes {dimension_semantics = [#tpu.dimension_semantics<parallel>], iteration_bounds = array<i64: 3>, scalar_prefetch = 0 : i64, scratch_operands = 0 : i64, tpu.core_type = #tpu.core_type<tc>, window_params = [{transform_indices = @transform_0, window_bounds = array<i64: 128, 160>}, {transform_indices = @transform_1, window_bounds = array<i64: 128, 1>}, {pipeline_mode = #tpu.pipeline_mode<synchronous>, transform_indices = @transform_2, window_bounds = array<i64: 160, 64>}, {pipeline_mode = #tpu.pipeline_mode<synchronous>, transform_indices = @transform_3, window_bounds = array<i64: 20, 64>}, {pipeline_mode = #tpu.pipeline_mode<synchronous>, transform_indices = @transform_4, window_bounds = array<i64: 1, 64>}, {pipeline_mode = #tpu.pipeline_mode<synchronous>, transform_indices = @transform_5, window_bounds = array<i64: 1, 64>}, {pipeline_mode = #tpu.pipeline_mode<synchronous>, transform_indices = @transform_6, window_bounds = array<i64: 1, 1>}, {transform_indices = @transform_7, window_bounds = array<i64: 1, 128>}]} {
    %c0 = arith.constant 0 : index
    %c0_0 = arith.constant 0 : index
    %0 = vector.load %arg2[%c0, %c0_0] : memref<128x1xi32, #tpu.memory_space<vmem>>, vector<128x1xi32>
    %1 = tpu.iota {dimensions = array<i32: 1>} : vector<128x20xi32>
    %2 = vector.broadcast %0 : vector<128x1xi32> to vector<128x20xi32>
    %3 = arith.cmpi eq, %2, %1 : vector<128x20xi32>
    %4 = arith.extui %3 : vector<128x20xi1> to vector<128x20xi32>
    %5 = arith.sitofp %4 : vector<128x20xi32> to vector<128x20xf32>
    %c0_1 = arith.constant 0 : index
    %c0_2 = arith.constant 0 : index
    %6 = vector.load %arg1[%c0_1, %c0_2] : memref<128x160xf32, #tpu.memory_space<vmem>>, vector<128x160xf32>
    %c0_3 = arith.constant 0 : index
    %c0_4 = arith.constant 0 : index
    %7 = vector.load %arg3[%c0_3, %c0_4] : memref<160x64xf32, #tpu.memory_space<vmem>>, vector<160x64xf32>
    %cst = arith.constant dense<0.000000e+00> : vector<128x64xf32>
    %8 = tpu.matmul %6, %7, %cst {dimension_numbers = #tpu.dot_dimension_numbers<[1], [0], [0], [1], [0, 0, 1, 1], [], []>} : vector<128x160xf32>, vector<160x64xf32>, vector<128x64xf32> -> vector<128x64xf32>
    %c0_5 = arith.constant 0 : index
    %c0_6 = arith.constant 0 : index
    %9 = vector.load %arg4[%c0_5, %c0_6] : memref<20x64xf32, #tpu.memory_space<vmem>>, vector<20x64xf32>
    %cst_7 = arith.constant dense<0.000000e+00> : vector<128x64xf32>
    %10 = tpu.matmul %5, %9, %cst_7 {dimension_numbers = #tpu.dot_dimension_numbers<[1], [0], [0], [1], [0, 0, 1, 1], [], []>} : vector<128x20xf32>, vector<20x64xf32>, vector<128x64xf32> -> vector<128x64xf32>
    %11 = arith.addf %8, %10 : vector<128x64xf32>
    %c0_8 = arith.constant 0 : index
    %c0_9 = arith.constant 0 : index
    %12 = vector.load %arg5[%c0_8, %c0_9] : memref<1x64xf32, #tpu.memory_space<vmem>>, vector<1x64xf32>
    %13 = vector.broadcast %12 : vector<1x64xf32> to vector<128x64xf32>
    %14 = arith.addf %11, %13 : vector<128x64xf32>
    %cst_10 = arith.constant 0.000000e+00 : f32
    %15 = vector.broadcast %cst_10 : f32 to vector<128x64xf32>
    %16 = arith.maximumf %14, %15 : vector<128x64xf32>
    %c0_11 = arith.constant 0 : index
    %c0_12 = arith.constant 0 : index
    %17 = vector.load %arg6[%c0_11, %c0_12] : memref<1x64xf32, #tpu.memory_space<vmem>>, vector<1x64xf32>
    %cst_13 = arith.constant dense<0.000000e+00> : vector<1x128xf32>
    %18 = tpu.matmul %17, %16, %cst_13 {dimension_numbers = #tpu.dot_dimension_numbers<[1], [1], [0], [0], [0, 0, 1, 0], [], []>} : vector<1x64xf32>, vector<128x64xf32>, vector<1x128xf32> -> vector<1x128xf32>
    %c0_14 = arith.constant 0 : index
    %c0_15 = arith.constant 0 : index
    %19 = vector.load %arg7[%c0_14, %c0_15] : memref<1x1xf32, #tpu.memory_space<vmem>>, vector<1x1xf32>
    %20 = vector.broadcast %19 : vector<1x1xf32> to vector<1x128xf32>
    %21 = arith.addf %18, %20 : vector<1x128xf32>
    %c0_16 = arith.constant 0 : index
    %c0_17 = arith.constant 0 : index
    %22 = vector.load %arg8[%c0_16, %c0_17] : memref<1x128xf32, #tpu.memory_space<vmem>>, vector<1x128xf32>
    tpu.vector_store %arg8[%c0_16, %c0_17], %21 {strides = array<i32>} : memref<1x128xf32, #tpu.memory_space<vmem>>, vector<1x128xf32>,
    return
  }
  func.func @transform_0(%arg0: i32) -> (i32, i32) {
    %c0_i32 = arith.constant 0 : i32
    %c0_i32_0 = arith.constant 0 : i32
    return %arg0, %c0_i32 : i32, i32
  }
  func.func @transform_1(%arg0: i32) -> (i32, i32) {
    %c0_i32 = arith.constant 0 : i32
    %c0_i32_0 = arith.constant 0 : i32
    return %arg0, %c0_i32 : i32, i32
  }
  func.func @transform_2(%arg0: i32) -> (i32, i32) {
    %c0_i32 = arith.constant 0 : i32
    %c0_i32_0 = arith.constant 0 : i32
    %c0_i32_1 = arith.constant 0 : i32
    return %c0_i32, %c0_i32_0 : i32, i32
  }
  func.func @transform_3(%arg0: i32) -> (i32, i32) {
    %c0_i32 = arith.constant 0 : i32
    %c0_i32_0 = arith.constant 0 : i32
    %c0_i32_1 = arith.constant 0 : i32
    return %c0_i32, %c0_i32_0 : i32, i32
  }
  func.func @transform_4(%arg0: i32) -> (i32, i32) {
    %c0_i32 = arith.constant 0 : i32
    %c0_i32_0 = arith.constant 0 : i32
    %c0_i32_1 = arith.constant 0 : i32
    return %c0_i32, %c0_i32_0 : i32, i32
  }
  func.func @transform_5(%arg0: i32) -> (i32, i32) {
    %c0_i32 = arith.constant 0 : i32
    %c0_i32_0 = arith.constant 0 : i32
    %c0_i32_1 = arith.constant 0 : i32
    return %c0_i32, %c0_i32_0 : i32, i32
  }
  func.func @transform_6(%arg0: i32) -> (i32, i32) {
    %c0_i32 = arith.constant 0 : i32
    %c0_i32_0 = arith.constant 0 : i32
    %c0_i32_1 = arith.constant 0 : i32
    return %c0_i32, %c0_i32_0 : i32, i32
  }
  func.func @transform_7(%arg0: i32) -> (i32, i32) {
    %c0_i32 = arith.constant 0 : i32
    %c0_i32_0 = arith.constant 0 : i32
    return %c0_i32, %arg0 : i32, i32
  }
}

</mosaic_0001>

<bundles_post_ra>
// kernel: tpu_custom_call.1
= control target key start
LH: loop header
LB: loop body
LE: loop exit
PB: predicated region body
PF: predicated region fallthrough
CT: control target
= control target key end

     0   :  { %s1537_s0 = inlined_call_operand.vmem [shape: f32[384,160], index: 0, kind: input, shape index: {}]   ;;  %s1538_s1 = inlined_call_operand.vmem [shape: s32[384,1], index: 1, kind: input, shape index: {}]   ;;  %s1539_s2 = inlined_call_operand.vmem [shape: f32[160,64], index: 2, kind: input, shape index: {}]   ;;  %s1540_s3 = inlined_call_operand.vmem [shape: f32[20,64], index: 3, kind: input, shape index: {}]   ;;  %s1541_s4 = inlined_call_operand.vmem [shape: f32[1,64], index: 4, kind: input, shape index: {}]   ;;  %s1542_s5 = inlined_call_operand.vmem [shape: f32[1,64], index: 5, kind: input, shape index: {}]   ;;  %s1543_s6 = inlined_call_operand.<no memory space> [shape: f32[1,1], index: 6, kind: input, shape index: {}]   ;;  %s1544_s7 = inlined_call_operand.hbm [shape: f32[1,384], index: 7, kind: output, shape index: {}]  }
   0x1   :  { %v12_v0 = vstv %s1543_s6 }
   0x2   :  { %13 = vst [vmem:[#allocation2] sm:$0x1] %v12_v0 }
   0x3   :  { %14 = vsyncpa [#allocation4], 0 }
   0x4   :  { %16 = vsyncpa [#allocation4 + $0x1], 0  ;;  %s1200_s26 = smov 0   ;;  %s1202_s27 = smov 0  }
   0x5   :  { %s1204_s28 = smov 0   ;;  %s1206_s29 = smov 0  }
   0x6 LB: > { %s1221_s6 = sadd.s32 4294967295, %s1153_s29   ;;  %s968_s30 = sadd.s32 4294967294, %s1153_s29   ;;  %s1153_s29 = sphi %s1206_s29, %s1550_s29   ;;  %s1149_s28 = sphi %s1204_s28, %s1549_s28   ;;  %s1145_s27 = sphi %s1202_s27, %s1548_s27   ;;  %s1141_s26 = sphi %s1200_s26, %s1547_s26  }
   0x7   : > { %s1225_s8 = sadd.s32 1, %s1153_s29   ;;  %s186_s9 = sadd.s32 1, %s1149_s28 }
   0x8   : > { %s183_s10 = ssub.s32 %s1153_s29, %s1225_s8  ;;  %p196_p0 = scmp.ne.s32.totalorder %s1149_s28, %s1145_s27 }
   0x9   : > { %p184_p1 = scmp.eq.s32.totalorder %s183_s10, 0  ;;  %p197_p2 = scmp.eq.s32.totalorder %s1221_s6, 2 }
   0xa   : > { %p202_p3 = scmp.ne.s32.totalorder %s1145_s27, %s1141_s26  ;;  %p203_p4 = scmp.eq.s32.totalorder %s968_s30, 2 }
   0xb   : > { %s1236_s11 = scalar_select %p184_p1, %s1149_s28, %s186_s9  }
   0xc   : > { %p1238_p5 = por %p197_p2, %p196_p0  ;;  %p1242_p6 = por %p203_p4, %p202_p3 }
   0xd   : > { %p971_p7 = scmp.ge.s32.totalorder %s1153_s29, 1  ;;  %p255_p8 = scmp.lt.s32.totalorder %s1153_s29, 4 }
   0xf   : > { %p256_p9 = pnand %p971_p7, %p255_p8 }
  0x10   : > { %s972_s14 = sshll.u32 (!%p256_p9), %s1221_s6, 4  ;;  %s290_s17 = sand.u32 (!%p256_p9), 1, %s1145_s27  }
  0x11   : > { %259 = sbr.rel (%p256_p9) target bundleno = 597 (0x255), region = 48  ;;  %p293_p10 = scmp.lt.s32.totalorder (!%p256_p9), %s972_s14, 47 }
  0x12   : > { %s897_s21 = scalar_lea.hbm (!%p256_p9), %s1544_s7, %s1221_s6  ;;  %s291_s22 = scalar_lea.vmem (!%p256_p9), [#allocation3], %s290_s17 }
  0x13   : > { %s899_s23 = sshll.u32 (!%p256_p9), %s291_s22, 4  ;;  %s901_s24 = sshll.u32 (!%p256_p9), %s897_s21, 4  ;;  %s900_s23 = int_to_ptr.vmem [resolvable:$true] %s899_s23  ;;  %s902_s24 = int_to_ptr.hbm [resolvable:$true] %s901_s24 }
  0x14   : > { %s889_s30 = scalar_lea.sflag (!%p256_p9), [#allocation4], %s290_s17  ;;  %s1105_s9 = sshra.s32 (!%p256_p9), %s902_s24, 4  ;;  %s1106_s9 = int_to_ptr.hbm [resolvable:$true] %s1105_s9 }
  0x15   : > { %p1112_p0 = scmp.lt.s32.totalorder (!%p256_p9), %s1106_s9, %s1544_s7 }
  0x16   : > { %v1155_v1 = vmov 0   ;;  %s1552_s14 = smov (!%p293_p10, %s972_s14), 47  ;;  %v466_v8 = vld [vmem:[%s1539_s2 + $0x78] sm:$0xff]  ;;  %v465_v9 = vld [vmem:[%s1539_s2 + $0x70] sm:$0xff]  ;;  %v464_v10 = vld [vmem:[%s1539_s2 + $0x68] sm:$0xff]  ;;  %vm523_vm0 = vcmask 1043456   ;;  %v321_v51 = vlaneseq }
  0x17   : > { %1088 = vset.pattern.permute.xlu1 %v1155_v1  ;;  %1087 = vset.pattern.permute.xlu0 %v1155_v1  ;;  %s976_s15 = sshll.u32 %s1552_s14, 3  ;;  %s1045_s25 = sshll.u32 %s1552_s14, 4  ;;  %v463_v11 = vld [vmem:[%s1539_s2 + $0x60] sm:$0xff]  ;;  %v470_v12 = vld [vmem:[%s1539_s2 + $0x98] sm:$0xff]  ;;  %v469_v15 = vld [vmem:[%s1539_s2 + $0x90] sm:$0xff]  ;;  %vm592_vm1 = vcmask 261120  }
  0x18   : > { %1089 = vset.pattern.permute.xlu2 %v1155_v1  ;;  %s1255_s18 = scalar_lea.vmem %s1538_s1, %s976_s15  ;;  %641 = vmatpush.msra.mxu1 %v466_v8  ;;  %s1287_s14 = scalar_lea.vmem %s1537_s0, %s1045_s25  ;;  %v462_v16 = vld [vmem:[%s1539_s2 + $0x58] sm:$0xff]  ;;  %v468_v17 = vld [vmem:[%s1539_s2 + $0x88] sm:$0xff]  ;;  %v473_v19 = vld [vmem:[%s1540_s3 + $0x10] sm:$0xf]  ;;  %v1363_v52 = vand.u32 127, %v321_v51  ;;  %v1156_v56 = vmov 0.0  }
  0x19   : > { %v307_v2 = vld [vmem:[%s1255_s18 + $0x10] sm:$0xff]  ;;  %v305_v3 = vld [vmem:[%s1255_s18] sm:$0xff]  ;;  %v308_v5 = vld [vmem:[%s1255_s18 + $0x18] sm:$0xff]  ;;  %718 = vmatpush.msra.mxu2 %v470_v12  ;;  %993 = vmatpush.msk.msra.mxu0 %vm523_vm0, %v473_v19  ;;  %vm474_vm3 = vcmask 162816   ;;  %s1107_s25 = scalar_lea.hbm %s1106_s9, 1 }
  0x1a   : > { %330 = vperm.xlu1 %1088, %v307_v2   ;;  %324 = vperm.xlu0 %1087, %v305_v3   ;;  %v309_v4 = vld [vmem:[%s1255_s18 + $0x20] sm:$0xff]  ;;  %v306_v6 = vld [vmem:[%s1255_s18 + $0x8] sm:$0xff]  ;;  %v312_v13 = vld [vmem:[%s1255_s18 + $0x38] sm:$0xff]  ;;  %p1108_p11 = scmp.ne.s32.totalorder %s1106_s9, %s1107_s25 }
  0x1b   : > { %336 = vperm.xlu2 %1089, %v309_v4   ;;  %v310_v7 = vld [vmem:[%s1255_s18 + $0x28] sm:$0xff]  ;;  %642 = vmatpush.msra.mxu1 %v465_v9  ;;  %v311_v14 = vld [vmem:[%s1255_s18 + $0x30] sm:$0xff]  ;;  %v313_v18 = vld [vmem:[%s1255_s18 + $0x40] sm:$0xff] }
  0x1c   : > { %719 = vmatpush.msra.mxu2 %v469_v15  ;;  %v461_v20 = vld [vmem:[%s1539_s2 + $0x50] sm:$0xff]  ;;  %v467_v21 = vld [vmem:[%s1539_s2 + $0x80] sm:$0xff]  ;;  %v420_v22 = vld [vmem:[%s1287_s14 + $0x8] sm:$0xff]  ;;  %p1109_p12 = pnand %p1108_p11, %p1238_p5 }
  0x1d   : > { %643 = vmatpush.msra.mxu1 %v464_v10  ;;  %v472_v23 = vld [vmem:[%s1540_s3 + $0x8] sm:$0xff]  ;;  %v459_v25 = vld [vmem:[%s1539_s2 + $0x40] sm:$0xff]  ;;  %v315_v26 = vld [vmem:[%s1255_s18 + $0x50] sm:$0xff] }
  0x1e   : > { %720 = vmatpush.msra.mxu2 %v468_v17  ;;  %v460_v24 = vld [vmem:[%s1539_s2 + $0x48] sm:$0xff]  ;;  %541 = vmatpush.msra.mxu0 %v472_v23  ;;  %v458_v28 = vld [vmem:[%s1539_s2 + $0x38] sm:$0xff]  ;;  %v457_v30 = vld [vmem:[%s1539_s2 + $0x30] sm:$0xff]  ;;  %p1110_p13 = pneg %p1109_p12 }
  0x1f   : > { %644 = vmatpush.msra.mxu1 %v463_v11  ;;  %v314_v27 = vld [vmem:[%s1255_s18 + $0x48] sm:$0xff]  ;;  %v316_v29 = vld [vmem:[%s1255_s18 + $0x58] sm:$0xff]  ;;  %v455_v32 = vld [vmem:[%s1539_s2 + $0x20] sm:$0xff] }
  0x20   : > { %721 = vmatpush.msra.mxu2 %v467_v21  ;;  %v456_v31 = vld [vmem:[%s1539_s2 + $0x28] sm:$0xff]  ;;  %v317_v34 = vld [vmem:[%s1255_s18 + $0x60] sm:$0xff]  ;;  %v454_v35 = vld [vmem:[%s1539_s2 + $0x18] sm:$0xff] }
  0x21   : > { %645 = vmatpush.msra.mxu1 %v462_v16  ;;  %1010 = vmatmul.msk.f32.vlgmr.msra.gmra.mxu2 %vm592_vm1, %v420_v22  ;;  %v318_v33 = vld [vmem:[%s1255_s18 + $0x68] sm:$0xff]  ;;  %v319_v36 = vld [vmem:[%s1255_s18 + $0x70] sm:$0xff]  ;;  %v808_v39 = vld [vmem:[#allocation2] sm:$0x1] }
  0x22   : > { %333 = vperm.xlu1 %1088, %v308_v5   ;;  %327 = vperm.xlu0 %1087, %v306_v6   ;;  %v453_v37 = vld [vmem:[%s1539_s2 + $0x10] sm:$0xff]  ;;  %v452_v38 = vld [vmem:[%s1539_s2 + $0x8] sm:$0xff]  ;;  %v320_v40 = vld [vmem:[%s1255_s18 + $0x78] sm:$0xff]  ;;  %s1111_s18 = scalar_lea.hbm %s1544_s7, 3 }
  0x23   : > { %339 = vperm.xlu2 %1089, %v310_v7   ;;  %646 = vmatpush.msra.mxu1 %v461_v20  ;;  %v471_v41 = vld [vmem:[%s1540_s3] sm:$0xff]  ;;  %v422_v44 = vld [vmem:[%s1287_s14 + $0x18] sm:$0xff]  ;;  %v421_v46 = vld [vmem:[%s1287_s14 + $0x10] sm:$0xff]  ;;  %p1113_p1 = scmp.lt.s32.totalorder %s1111_s18, %s1107_s25 }
  0x24   : > { %v451_v42 = vld [vmem:[%s1539_s2] sm:$0xff]  ;;  %542 = vmatpush.msra.mxu0 %v471_v41  ;;  %v424_v47 = vld [vmem:[%s1287_s14 + $0x28] sm:$0xff]  ;;  %v426_v50 = vld [vmem:[%s1287_s14 + $0x38] sm:$0xff] }
  0x25   : > { %647 = vmatpush.msra.mxu1 %v460_v24  ;;  %v419_v43 = vld [vmem:[%s1287_s14] sm:$0xff]  ;;  %v425_v54 = vld [vmem:[%s1287_s14 + $0x30] sm:$0xff]  ;;  %v428_v55 = vld [vmem:[%s1287_s14 + $0x48] sm:$0xff]  ;;  %p1114_p2 = por %p1113_p1, %p1112_p0 }
  0x26   : > { %v423_v49 = vld [vmem:[%s1287_s14 + $0x20] sm:$0xff]  ;;  %v430_v63 = vld [vmem:[%s1287_s14 + $0x58] sm:$0xff]  ;;  %v429_v5 = vld [vmem:[%s1287_s14 + $0x50] sm:$0xff] }
  0x27   : > { %648 = vmatpush.msra.mxu1 %v459_v25  ;;  %v427_v62 = vld [vmem:[%s1287_s14 + $0x40] sm:$0xff]  ;;  %v432_v6 = vld [vmem:[%s1287_s14 + $0x68] sm:$0xff]  ;;  %v434_v12 = vld [vmem:[%s1287_s14 + $0x78] sm:$0xff]  ;;  %p1115_p3 = pnand %p1114_p2, %p1110_p13 }
  0x28   : > { %v431_v11 = vld [vmem:[%s1287_s14 + $0x60] sm:$0xff]  ;;  %v436_v19 = vld [vmem:[%s1287_s14 + $0x88] sm:$0xff] }
  0x29   : > { %649 = vmatpush.msra.mxu1 %v458_v28  ;;  %1011 = vmatmul.msk.f32.gmra.mxu2 %vm592_vm1, %v422_v44  ;;  %v435_v25 = vld [vmem:[%s1287_s14 + $0x80] sm:$0xff]  ;;  %v448_v41 = vld [vmem:[%s1287_s14 + $0xe8] sm:$0xff]  ;;  %v449_v44 = vld [vmem:[%s1287_s14 + $0xf0] sm:$0xff] }
  0x2a   : > { %345 = vperm.xlu1 %1088, %v312_v13   ;;  %342 = vperm.xlu0 %1087, %v311_v14  }
  0x2b   : > { %348 = vperm.xlu2 %1089, %v313_v18   ;;  %650 = vmatpush.msra.mxu1 %v457_v30  ;;  %v433_v18 = vld [vmem:[%s1287_s14 + $0x70] sm:$0xff] }
  0x2c   : > { %v437_v30 = vld [vmem:[%s1287_s14 + $0x90] sm:$0xff] }
  0x2d   : > { %651 = vmatpush.msra.mxu1 %v456_v31  ;;  %v440_v31 = vld [vmem:[%s1287_s14 + $0xa8] sm:$0xff] }
  0x2f   : > { %652 = vmatpush.msra.mxu1 %v455_v32 }
  0x31   : > { %653 = vmatpush.msra.mxu1 %v454_v35  ;;  %1012 = vmatmul.msk.f32.gmra.mxu2 %vm592_vm1, %v424_v47 }
  0x32   : > { %354 = vperm.xlu1 %1088, %v315_v26   ;;  %351 = vperm.xlu0 %1087, %v314_v27   ;;  %v438_v26 = vld [vmem:[%s1287_s14 + $0x98] sm:$0xff] }
  0x33   : > { %357 = vperm.xlu2 %1089, %v316_v29   ;;  %654 = vmatpush.msra.mxu1 %v453_v37  ;;  %v444_v37 = vld [vmem:[%s1287_s14 + $0xc8] sm:$0xff] }
  0x35   : > { %655 = vmatpush.msra.mxu1 %v452_v38  ;;  %v443_v38 = vld [vmem:[%s1287_s14 + $0xc0] sm:$0xff] }
  0x37   : > { %656 = vmatpush.msra.mxu1 %v451_v42  ;;  %v447_v42 = vld [vmem:[%s1287_s14 + $0xe0] sm:$0xff] }
  0x38   : > { %657 = vmatmul.f32.vlgmr.msra.gmra.mxu1 %v419_v43  ;;  %v450_v43 = vld [vmem:[%s1287_s14 + $0xf8] sm:$0xff] }
  0x39   : > { %1013 = vmatmul.msk.f32.gmra.mxu2 %vm592_vm1, %v426_v50 }
  0x3a   : > { %363 = vperm.xlu1 %1088, %v318_v33   ;;  %360 = vperm.xlu0 %1087, %v317_v34   ;;  %v439_v33 = vld [vmem:[%s1287_s14 + $0xa0] sm:$0xff]  ;;  %v442_v34 = vld [vmem:[%s1287_s14 + $0xb8] sm:$0xff] }
  0x3b   : > { %366 = vperm.xlu2 %1089, %v319_v36   ;;  %v441_v36 = vld [vmem:[%s1287_s14 + $0xb0] sm:$0xff] }
  0x40   : > { %660 = vmatmul.f32.gmra.mxu1 %v421_v46 }
  0x41   : > { %1014 = vmatmul.msk.f32.gmra.mxu2 %vm592_vm1, %v428_v55 }
  0x42   : > { %811 = vperm.xlu1 %1088, %v808_v39   ;;  %369 = vperm.xlu0 %1087, %v320_v40   ;;  %v446_v39 = vld [vmem:[%s1287_s14 + $0xd8] sm:$0xff]  ;;  %v445_v40 = vld [vmem:[%s1287_s14 + $0xd0] sm:$0xff] }
  0x48   : > { %663 = vmatmul.f32.gmra.mxu1 %v423_v49 }
  0x49   : > { %1015 = vmatmul.msk.f32.gmra.mxu2 %vm592_vm1, %v430_v63 }
  0x50   : > { %666 = vmatmul.f32.gmra.mxu1 %v425_v54 }
  0x51   : > { %1016 = vmatmul.msk.f32.gmra.mxu2 %vm592_vm1, %v432_v6 }
  0x58   : > { %669 = vmatmul.f32.gmra.mxu1 %v427_v62 }
  0x59   : > { %1017 = vmatmul.msk.f32.gmra.mxu2 %vm592_vm1, %v434_v12 }
  0x60   : > { %672 = vmatmul.f32.gmra.mxu1 %v429_v5 }
  0x61   : > { %1018 = vmatmul.msk.f32.gmra.mxu2 %vm592_vm1, %v436_v19 }
  0x68   : > { %675 = vmatmul.f32.gmra.mxu1 %v431_v11 }
  0x69   : > { %1019 = vmatmul.msk.f32.gmra.mxu2 %vm592_vm1, %v438_v26 }
  0x70   : > { %678 = vmatmul.f32.gmra.mxu1 %v433_v18 }
  0x71   : > { %1020 = vmatmul.msk.f32.gmra.mxu2 %vm592_vm1, %v440_v31 }
  0x75   : > { %v1353_v45 = vpop.permute.xlu2 %336 }
  0x76   : > { %vm375_vm12 = vcmp.eq.s32.totalorder %v1353_v45, %v1363_v52 }
  0x77   : > { %v981_v20 = vsel %vm375_vm12, 1.0, %v1156_v56 }
  0x78   : > { %681 = vmatmul.f32.gmra.mxu1 %v435_v25 }
  0x79   : > { %1021 = vmatmul.msk.f32.gmra.mxu2 %vm592_vm1, %v442_v34 }
  0x7d   : > { %v1358_v48 = vpop.permute.xlu2 %339 }
  0x7e   : > { %vm376_vm15 = vcmp.eq.s32.totalorder %v1358_v48, %v1363_v52 }
  0x7f   : > { %v982_v28 = vsel %vm376_vm15, 1.0, %v1156_v56 }
  0x80   : > { %684 = vmatmul.f32.gmra.mxu1 %v437_v30 }
  0x81   : > { %1022 = vmatmul.msk.f32.gmra.mxu2 %vm592_vm1, %v444_v37 }
  0x85   : > { %v349_v53 = vpop.permute.xlu2 %348 }
  0x86   : > { %vm379_vm2 = vcmp.eq.s32.totalorder %v349_v53, %v1363_v52 }
  0x87   : > { %v1369_v57 = vsel %vm379_vm2, 1.0, %v1156_v56 }
  0x88   : > { %687 = vmatmul.f32.gmra.mxu1 %v439_v33 }
  0x89   : > { %1023 = vmatmul.msk.f32.gmra.mxu2 %vm592_vm1, %v446_v39 }
  0x8c   : > { %v331_v58 = vpop.permute.xlu1 %330  ;;  %v325_v59 = vpop.permute.xlu0 %324 }
  0x8d   : > { %vm371_vm4 = vcmp.eq.s32.totalorder %v325_v59, %v1363_v52  ;;  %v358_v61 = vpop.permute.xlu2 %357  ;;  %vm373_vm8 = vcmp.eq.s32.totalorder %v331_v58, %v1363_v52 }
  0x8e   : > { %v977_v60 = vsel %vm371_vm4, 1.0, %v1156_v56  ;;  %vm382_vm5 = vcmp.eq.s32.totalorder %v358_v61, %v1363_v52  ;;  %v979_v8 = vsel %vm373_vm8, 1.0, %v1156_v56 }
  0x8f   : > { %994 = vmatmul.msk.f32.vlgmr.msra.gmra.mxu0 %vm474_vm3, %v977_v60  ;;  %v1379_v0 = vsel %vm382_vm5, 1.0, %v1156_v56 }
  0x90   : > { %690 = vmatmul.f32.gmra.mxu1 %v441_v36 }
  0x91   : > { %1024 = vmatmul.msk.f32.gmra.mxu2 %vm592_vm1, %v448_v41 }
  0x94   : > { %v334_v1 = vpop.permute.xlu1 %333  ;;  %v328_v2 = vpop.permute.xlu0 %327 }
  0x95   : > { %vm372_vm6 = vcmp.eq.s32.totalorder %v328_v2, %v1363_v52  ;;  %v367_v4 = vpop.permute.xlu2 %366  ;;  %vm374_vm9 = vcmp.eq.s32.totalorder %v334_v1, %v1363_v52 }
  0x96   : > { %v978_v3 = vsel %vm372_vm6, 1.0, %v1156_v56  ;;  %vm385_vm7 = vcmp.eq.s32.totalorder %v367_v4, %v1363_v52  ;;  %v980_v15 = vsel %vm374_vm9, 1.0, %v1156_v56 }
  0x97   : > { %995 = vmatmul.msk.f32.gmra.mxu0 %vm474_vm3, %v978_v3  ;;  %v1389_v7 = vsel %vm385_vm7, 1.0, %v1156_v56 }
  0x98   : > { %693 = vmatmul.f32.gmra.mxu1 %v443_v38 }
  0x99   : > { %1025 = vmatmul.msk.f32.gmra.mxu2 %vm592_vm1, %v450_v43  ;;  %vm815_vm1 = vcmask 523264  }
  0x9c   : > { %v346_v9 = vpop.permute.xlu1 %345  ;;  %v343_v10 = vpop.permute.xlu0 %342 }
  0x9d   : > { %vm377_vm2 = vcmp.eq.s32.totalorder %v343_v10, %v1363_v52  ;;  %vm378_vm4 = vcmp.eq.s32.totalorder %v346_v9, %v1363_v52 }
  0x9e   : > { %v983_v32 = vsel %vm377_vm2, 1.0, %v1156_v56  ;;  %v984_v35 = vsel %vm378_vm4, 1.0, %v1156_v56 }
  0x9f   : > { %996 = vmatmul.msk.f32.gmra.mxu0 %vm474_vm3, %v979_v8 }
  0xa0   : > { %696 = vmatmul.f32.gmra.mxu1 %v445_v40 }
  0xa4   : > { %v355_v13 = vpop.permute.xlu1 %354  ;;  %v352_v14 = vpop.permute.xlu0 %351 }
  0xa5   : > { %vm381_vm10 = vcmp.eq.s32.totalorder %v355_v13, %v1363_v52  ;;  %vm380_vm11 = vcmp.eq.s32.totalorder %v352_v14, %v1363_v52  ;;  %v723_v46 = vpop.f32.mrf.mxu2 }
  0xa6   : > { %v987_v16 = vsel %vm381_vm10, 1.0, %v1156_v56  ;;  %v986_v17 = vsel %vm380_vm11, 1.0, %v1156_v56 }
  0xa7   : > { %997 = vmatmul.msk.f32.gmra.mxu0 %vm474_vm3, %v980_v15 }
  0xa8   : > { %699 = vmatmul.f32.gmra.mxu1 %v447_v42 }
  0xac   : > { %v364_v21 = vpop.permute.xlu1 %363  ;;  %v361_v22 = vpop.permute.xlu0 %360 }
  0xad   : > { %vm384_vm13 = vcmp.eq.s32.totalorder %v364_v21, %v1363_v52  ;;  %vm383_vm14 = vcmp.eq.s32.totalorder %v361_v22, %v1363_v52  ;;  %v726_v48 = vpop.f32.mrf.mxu2 }
  0xae   : > { %v990_v23 = vsel %vm384_vm13, 1.0, %v1156_v56  ;;  %v989_v24 = vsel %vm383_vm14, 1.0, %v1156_v56 }
  0xaf   : > { %998 = vmatmul.msk.f32.gmra.mxu0 %vm474_vm3, %v981_v20 }
  0xb0   : > { %702 = vmatmul.f32.gmra.mxu1 %v449_v44 }
  0xb4   : > { %v370_v27 = vpop.permute.xlu0 %369 }
  0xb5   : > { %vm386_vm0 = vcmp.eq.s32.totalorder %v370_v27, %v1363_v52  ;;  %v658_v45 = vpop.f32.mrf.mxu1  ;;  %v729_v50 = vpop.f32.mrf.mxu2 }
  0xb6   : > { %v992_v29 = vsel %vm386_vm0, 1.0, %v1156_v56 }
  0xb7   : > { %999 = vmatmul.msk.f32.gmra.mxu0 %vm474_vm3, %v982_v28 }
  0xbd   : > { %v661_v47 = vpop.f32.mrf.mxu1  ;;  %v732_v53 = vpop.f32.mrf.mxu2 }
  0xbf   : > { %1000 = vmatmul.msk.f32.gmra.mxu0 %vm474_vm3, %v983_v32 }
  0xc5   : > { %v664_v49 = vpop.f32.mrf.mxu1  ;;  %v735_v59 = vpop.f32.mrf.mxu2 }
  0xc7   : > { %1001 = vmatmul.msk.f32.gmra.mxu0 %vm474_vm3, %v984_v35 }
  0xcd   : > { %v667_v51 = vpop.f32.mrf.mxu1  ;;  %v738_v1 = vpop.f32.mrf.mxu2 }
  0xcf   : > { %1002 = vmatmul.msk.f32.gmra.mxu0 %vm474_vm3, %v1369_v57 }
  0xd5   : > { %v670_v57 = vpop.f32.mrf.mxu1  ;;  %v741_v6 = vpop.f32.mrf.mxu2 }
  0xd7   : > { %1003 = vmatmul.msk.f32.gmra.mxu0 %vm474_vm3, %v986_v17 }
  0xdd   : > { %v673_v63 = vpop.f32.mrf.mxu1  ;;  %v744_v12 = vpop.f32.mrf.mxu2 }
  0xdf   : > { %1004 = vmatmul.msk.f32.gmra.mxu0 %vm474_vm3, %v987_v16 }
  0xe5   : > { %v676_v5 = vpop.f32.mrf.mxu1  ;;  %v747_v18 = vpop.f32.mrf.mxu2 }
  0xe7   : > { %1005 = vmatmul.msk.f32.gmra.mxu0 %vm474_vm3, %v1379_v0 }
  0xed   : > { %v679_v10 = vpop.f32.mrf.mxu1 }
  0xef   : > { %1006 = vmatmul.msk.f32.gmra.mxu0 %vm474_vm3, %v989_v24  ;;  %v750_v24 = vpop.f32.mrf.mxu2 }
  0xf5   : > { %v682_v16 = vpop.f32.mrf.mxu1 }
  0xf7   : > { %1007 = vmatmul.msk.f32.gmra.mxu0 %vm474_vm3, %v990_v23 }
  0xfd   : > { %v685_v22 = vpop.f32.mrf.mxu1 }
  0xff   : > { %1008 = vmatmul.msk.f32.gmra.mxu0 %vm474_vm3, %v1389_v7 }
 0x105   : > { %v688_v28 = vpop.f32.mrf.mxu1 }
 0x107   : > { %1009 = vmatmul.msk.f32.gmra.mxu0 %vm474_vm3, %v992_v29  ;;  %v753_v29 = vpop.f32.mrf.mxu2 }
 0x10c   : > { %v544_v52 = vpop.f32.mrf.mxu0 }
 0x10d   : > { %v659_v54 = vadd.f32 %v658_v45, %v544_v52  ;;  %v691_v33 = vpop.f32.mrf.mxu1 }
 0x10f   : > { %v1461_v55 = vadd.f32 %v723_v46, %v659_v54  ;;  %v756_v35 = vpop.f32.mrf.mxu2 }
 0x114   : > { %v547_v56 = vpop.f32.mrf.mxu0 }
 0x115   : > { %v662_v58 = vadd.f32 %v661_v47, %v547_v56  ;;  %v694_v37 = vpop.f32.mrf.mxu1 }
 0x117   : > { %v1463_v60 = vadd.f32 %v726_v48, %v662_v58  ;;  %v759_v38 = vpop.f32.mrf.mxu2 }
 0x11c   : > { %v550_v61 = vpop.f32.mrf.mxu0 }
 0x11d   : > { %v665_v62 = vadd.f32 %v664_v49, %v550_v61  ;;  %v697_v40 = vpop.f32.mrf.mxu1 }
 0x11f   : > { %v1465_v0 = vadd.f32 %v729_v50, %v665_v62  ;;  %v762_v41 = vpop.f32.mrf.mxu2 }
 0x124   : > { %v553_v2 = vpop.f32.mrf.mxu0 }
 0x125   : > { %v668_v3 = vadd.f32 %v667_v51, %v553_v2  ;;  %v700_v43 = vpop.f32.mrf.mxu1  ;;  %v1090_v51 = vld [vmem:[%s1541_s4] ss:$0 sm:$0xff] }
 0x127   : > { %v1467_v4 = vadd.f32 %v732_v53, %v668_v3  ;;  %v765_v44 = vpop.f32.mrf.mxu2 }
 0x12c   : > { %v556_v7 = vpop.f32.mrf.mxu0 }
 0x12d   : > { %v671_v8 = vadd.f32 %v670_v57, %v556_v7  ;;  %v703_v46 = vpop.f32.mrf.mxu1 }
 0x12f   : > { %v1469_v9 = vadd.f32 %v735_v59, %v671_v8  ;;  %v768_v49 = vpop.f32.mrf.mxu2 }
 0x134   : > { %v559_v11 = vpop.f32.mrf.mxu0 }
 0x135   : > { %v674_v13 = vadd.f32 %v673_v63, %v559_v11 }
 0x137   : > { %v1471_v14 = vadd.f32 %v738_v1, %v674_v13 }
 0x13c   : > { %v562_v15 = vpop.f32.mrf.mxu0 }
 0x13d   : > { %v677_v17 = vadd.f32 %v676_v5, %v562_v15 }
 0x13f   : > { %v1473_v19 = vadd.f32 %v741_v6, %v677_v17 }
 0x144   : > { %v565_v20 = vpop.f32.mrf.mxu0 }
 0x145   : > { %v680_v21 = vadd.f32 %v679_v10, %v565_v20 }
 0x147   : > { %v745_v23 = vadd.f32 %v744_v12, %v680_v21 }
 0x149   : > { %v782_v20 = vadd.f32 %v1090_v51, %v745_v23  ;;  %v778_v23 = vadd.f32 %v1090_v51, %v1467_v4 }
 0x14c   : > { %v568_v25 = vpop.f32.mrf.mxu0 }
 0x14d   : > { %v683_v26 = vadd.f32 %v682_v16, %v568_v25  ;;  %v780_v25 = vadd.f32 %v1090_v51, %v1471_v14  ;;  %v776_v14 = vadd.f32 %v1090_v51, %v1463_v60  ;;  %v812_v60 = vpop.permute.xlu1 %811 }
 0x14f   : > { %v748_v27 = vadd.f32 %v747_v18, %v683_v26 }
 0x151   : > { %v783_v17 = vadd.f32 %v1090_v51, %v748_v27  ;;  %v796_v27 = vmax.f32 %v780_v25, 0.0 }
 0x153   : > { %v799_v21 = vmax.f32 %v783_v17, 0.0 }
 0x154   : > { %v571_v30 = vpop.f32.mrf.mxu0 }
 0x155   : > { %v686_v31 = vadd.f32 %v685_v22, %v571_v30  ;;  %v781_v22 = vadd.f32 %v1090_v51, %v1473_v19  ;;  %v777_v19 = vadd.f32 %v1090_v51, %v1465_v0  ;;  %v794_v30 = vmax.f32 %v778_v23, 0.0  ;;  %v807_v0 = vld [vmem:[%s1542_s5] sm:$0x1] }
 0x157   : > { %v751_v32 = vadd.f32 %v750_v24, %v686_v31  ;;  %v798_v24 = vmax.f32 %v782_v20, 0.0  ;;  %v797_v26 = vmax.f32 %v781_v22, 0.0  ;;  %v793_v31 = vmax.f32 %v777_v19, 0.0 }
 0x159   : > { %v784_v15 = vadd.f32 %v1090_v51, %v751_v32  ;;  %v792_v32 = vmax.f32 %v776_v14, 0.0 }
 0x15b   : > { %v800_v18 = vmax.f32 %v784_v15, 0.0 }
 0x15c   : > { %v574_v34 = vpop.f32.mrf.mxu0 }
 0x15d   : > { %v689_v3 = vadd.f32 %v688_v28, %v574_v34  ;;  %v779_v28 = vadd.f32 %v1090_v51, %v1469_v9  ;;  %v775_v9 = vadd.f32 %v1090_v51, %v1461_v55  ;;  %v814_v55 = vperm.slane %v812_v60, 0 }
 0x15f   : > { %v754_v8 = vadd.f32 %v753_v29, %v689_v3  ;;  %v795_v29 = vmax.f32 %v779_v28, 0.0  ;;  %v791_v4 = vmax.f32 %v775_v9, 0.0 }
 0x161   : > { %v785_v12 = vadd.f32 %v1090_v51, %v754_v8 }
 0x163   : > { %v801_v16 = vmax.f32 %v785_v12, 0.0 }
 0x164   : > { %v577_v36 = vpop.f32.mrf.mxu0 }
 0x165   : > { %v692_v62 = vadd.f32 %v691_v33, %v577_v36 }
 0x167   : > { %v757_v5 = vadd.f32 %v756_v35, %v692_v62 }
 0x169   : > { %v786_v10 = vadd.f32 %v1090_v51, %v757_v5 }
 0x16b   : > { %v802_v13 = vmax.f32 %v786_v10, 0.0 }
 0x16c   : > { %v580_v39 = vpop.f32.mrf.mxu0 }
 0x16d   : > { %v695_v57 = vadd.f32 %v694_v37, %v580_v39 }
 0x16f   : > { %v760_v63 = vadd.f32 %v759_v38, %v695_v57 }
 0x171   : > { %v787_v6 = vadd.f32 %v1090_v51, %v760_v63 }
 0x173   : > { %v803_v11 = vmax.f32 %v787_v6, 0.0 }
 0x174   : > { %v583_v42 = vpop.f32.mrf.mxu0 }
 0x175   : > { %v698_v52 = vadd.f32 %v697_v40, %v583_v42 }
 0x177   : > { %v763_v58 = vadd.f32 %v762_v41, %v698_v52 }
 0x179   : > { %v788_v1 = vadd.f32 %v1090_v51, %v763_v58 }
 0x17b   : > { %v804_v7 = vmax.f32 %v788_v1, 0.0 }
 0x17c   : > { %v586_v45 = vpop.f32.mrf.mxu0 }
 0x17d   : > { %v701_v47 = vadd.f32 %v700_v43, %v586_v45 }
 0x17f   : > { %v766_v53 = vadd.f32 %v765_v44, %v701_v47 }
 0x181   : > { %v789_v59 = vadd.f32 %v1090_v51, %v766_v53 }
 0x183   : > { %v805_v2 = vmax.f32 %v789_v59, 0.0 }
 0x184   : > { %v589_v48 = vpop.f32.mrf.mxu0 }
 0x185   : > { %v704_v50 = vadd.f32 %v703_v46, %v589_v48 }
 0x187   : > { %v769_v54 = vadd.f32 %v768_v49, %v704_v50 }
 0x189   : > { %v790_v56 = vadd.f32 %v1090_v51, %v769_v54 }
 0x18b   : > { %v806_v61 = vmax.f32 %v790_v56, 0.0 }
 0x18d   : > { %1026 = vmatpush.xpose.msk.msra.mxu3 %vm815_vm1, %v806_v61 }
 0x191   : > { %1027 = vmatpush.xpose.msk.msra.mxu3 %vm815_vm1, %v805_v2 }
 0x195   : > { %1028 = vmatpush.xpose.msk.msra.mxu3 %vm815_vm1, %v804_v7 }
 0x199   : > { %1029 = vmatpush.xpose.msk.msra.mxu3 %vm815_vm1, %v803_v11 }
 0x19d   : > { %1030 = vmatpush.xpose.msk.msra.mxu3 %vm815_vm1, %v802_v13 }
 0x1a1   : > { %1031 = vmatpush.xpose.msk.msra.mxu3 %vm815_vm1, %v801_v16 }
 0x1a5   : > { %1032 = vmatpush.xpose.msk.msra.mxu3 %vm815_vm1, %v800_v18 }
 0x1a9   : > { %1033 = vmatpush.xpose.msk.msra.mxu3 %vm815_vm1, %v799_v21 }
 0x1ad   : > { %1034 = vmatpush.xpose.msk.msra.mxu3 %vm815_vm1, %v798_v24 }
 0x1b1   : > { %1035 = vmatpush.xpose.msk.msra.mxu3 %vm815_vm1, %v797_v26 }
 0x1b5   : > { %1036 = vmatpush.xpose.msk.msra.mxu3 %vm815_vm1, %v796_v27 }
 0x1b9   : > { %1037 = vmatpush.xpose.msk.msra.mxu3 %vm815_vm1, %v795_v29 }
 0x1bd   : > { %1038 = vmatpush.xpose.msk.msra.mxu3 %vm815_vm1, %v794_v30 }
 0x1c1   : > { %1039 = vmatpush.xpose.msk.msra.mxu3 %vm815_vm1, %v793_v31 }
 0x1c5   : > { %1040 = vmatpush.xpose.msk.msra.mxu3 %vm815_vm1, %v792_v32 }
 0x1c9   : > { %1041 = vmatpush.xpose.msk.msra.mxu3 %vm815_vm1, %v791_v4 }
 0x1cc   : > { %1042 = vmatmul.msk.f32.vlgmr.msra.gmra.mxu3 %vm815_vm1, %v807_v0 }
 0x24f   : > { %v884_v33 = vpop.f32.mrf.mxu3 }
 0x250   : > { %v885_v34 = vadd.f32 %v884_v33, %v814_v55 }
 0x252   : > { %887 = vst [vmem:[%s291_s22] sm:$0x1] %v885_v34 }
 0x253   : > { %1118 = shalt.err (!%p1115_p3)
}
 0x254   : > { %1046 = dma.vmem_to_hbm [thread:$0]  (%p1238_p5), %s900_s23, 16, %s902_s24, %s889_s30  }
 0x255 PF: > { %p1052_p4 = scmp.ge.s32.totalorder %s1153_s29, 2  ;;  %s913_s16 = sand.u32 1, %s1141_s26  }
 0x256   : > { %s914_s17 = scalar_lea.sflag [#allocation4], %s913_s16 }
 0x257   : > { %p1049_p7 = pnand %p1052_p4, %p1242_p6 }
 0x259   : > { %p1050_p8 = pneg %p1049_p7 }
 0x25b   : > { %1136 = dma.done.wait (%p1050_p8), %s914_s17, 16  }
 0x25c   : > { %1138 = vsyncadd (%p1050_p8), %s914_s17, 4294967280  ;;  %p19_p9 = scmp.ge.s32.totalorder %s1225_s8, 5   ;;  %s1547_s26 = smov %s1145_s27 }
 0x25d   : > { %s1548_s27 = smov %s1149_s28  ;;  %s1549_s28 = smov %s1236_s11 }
 0x25e   : > { %s1550_s29 = smov %s1225_s8  ;;  %21 = sbr.rel (!%p19_p9) target bundleno = 6 (0x6), region = 86 }
 0x263   :  { %919 = vsyncpa [#allocation4], 1 }
 0x264   :  { %921 = vsyncpa [#allocation4 + $0x1], 1 }

</bundles_post_ra>
